<compile_context>
chip_gen: v7x
topology: tpu7x:2x2x1
jax: 0.10.0
libtpu: 0.0.40
codegen_flags: <defaults>
</compile_context>

<pallas_src>
import numpy as np
import jax
import jax.numpy as jnp
from jax import lax
from jax.experimental import pallas as pl
from jax.experimental.pallas import tpu as pltpu

ADA_EPS = 1e-5   # AdaptiveInstanceNorm1d eps
BN_EPS = 1e-5    # BatchNorm1d eps


def _decoder_kernel(x_ref, w1s_ref, t_ref, w4_ref, b4_ref, o_ref):
    # x_ref:   (bb, Din, TM)    w1s_ref: (bb, C, Din)   t_ref: (bb, C, 1)
    # w4_ref:  (3, C)           b4_ref:  (3, 1)         o_ref: (bb, 3, TM)
    bb = x_ref.shape[0]
    w4 = w4_ref[...]                      # (3, C)  shared across batches
    b4 = b4_ref[...]                      # (3, 1)
    for b in range(bb):                   # static unroll over merged batches
        x = x_ref[b]                      # (Din, TM)
        w1s = w1s_ref[b]                  # (C, Din)   = S * W1 (scale pre-folded)
        din = w1s.shape[1]

        # conv1 + fused AdaIN/BN affine: accumulator seeded with the fused
        # shift T, then Din broadcast multiply-adds on the VPU (lane-dense in M).
        h = w1s[:, 0:1] * x[0:1, :] + t_ref[b]          # (C, TM)
        for d in range(1, din):
            h = h + w1s[:, d:d + 1] * x[d:d + 1, :]
        a = jnp.maximum(h, 0.0)                          # ReLU

        # conv4: (3, C) @ (C, TM) on the MXU, bias, tanh; output lane-dense in M.
        y = jnp.dot(w4, a, preferred_element_type=jnp.float32) + b4
        o_ref[b] = jnp.tanh(y)


def _pick_m_tile(m_pad, bb, din, c, want_multi):
    """Largest 128-multiple divisor of m_pad under a v7x-safe VMEM budget."""
    units = m_pad // 128
    # Rough per-128-lane bytes: intermediates (~4 x (C,TM) f32 live per batch)
    # plus double-buffered x/out blocks.
    per_unit_bytes = 128 * 4 * bb * (4 * c + 2 * (din + 3))
    inter_budget = 24 * 1024 * 1024               # keep headroom on v7x (64 MiB VMEM)
    cap_units = max(1, min(16, inter_budget // max(per_unit_bytes, 1)))  # cap m_tile at 2048
    m_units = 1
    for d in range(min(units, cap_units), 0, -1):
        if units % d == 0:
            m_units = d
            break
    # Prefer >= 2 grid steps overall so v7x's 2 TensorCores can both be used.
    if want_multi and m_units == units and units >= 2:
        for d in range(units // 2, 0, -1):
            if units % d == 0:
                m_units = d
                break
    return 128 * m_units


def mview_decoder(x_ncm, params, *, m_tile=None):
    """x_ncm: (B, Din, M) float32 -> (B, 3, M) float32 (PyTorch NCM convention)."""
    B, Din, M = x_ncm.shape
    C = params['w1_cd'].shape[0]

    x = x_ncm.astype(jnp.float32)
    w1 = params['w1_cd'].astype(jnp.float32)                 # (C, Din)  torch conv1 weight squeezed
    b1 = params['b1'].astype(jnp.float32)                    # (C,)
    aw = params['ada_w'].reshape(B, C).astype(jnp.float32)   # AdaIN weight (b-major, as torch view)
    ab = params['ada_b'].reshape(B, C).astype(jnp.float32)
    bg = params['bn_g'].astype(jnp.float32)                  # (C,)
    bb_ = params['bn_b'].astype(jnp.float32)
    w4 = params['w4_nc'].astype(jnp.float32)                 # (3, C)
    b4 = params['b4'].astype(jnp.float32)                    # (3,)

    # ---- analytic per-(b,c) stats from uncentered x moments (single logical pass) ----
    # h = W1 @ x + b1 per batch, so the instance mean/var over M follow from
    # mean(x) and E[x x^T].  Uncentered -> no extra centered temp pass over x.
    xm = jnp.mean(x, axis=2)                                  # (B, Din)
    exx = jnp.einsum('bim,bjm->bij', x, x) / M                # (B, Din, Din)
    cov = exx - xm[:, :, None] * xm[:, None, :]               # mild cancellation risk; var clamped below
    mu = jnp.einsum('cd,bd->bc', w1, xm) + b1[None, :]        # instance mean of h  (B, C)
    var = jnp.maximum(jnp.einsum('ci,bij,cj->bc', w1, cov, w1), 0.0)   # instance (biased) var of h
    r = lax.rsqrt(var + ADA_EPS)

    # After instance-norm + AdaIN affine: per-(b,c) mean = ab, var = aw^2 * var/(var+eps).
    h2_var = jnp.square(aw) * var * jnp.square(r)
    bmu = jnp.mean(ab, axis=0)                                # (C,)  BatchNorm mean over (B, M)
    bvar = jnp.mean(h2_var + jnp.square(ab - bmu[None, :]), axis=0)    # biased var, nonneg by construction
    rb = lax.rsqrt(bvar + BN_EPS)

    # Fold the whole AdaIN/BN affine chain into y = (S*W1) @ x + Tfold.
    S = (bg * rb)[None, :] * aw * r                                            # (B, C)
    T = (bg * rb)[None, :] * (ab - bmu[None, :] - aw * r * mu) + bb_[None, :]  # (B, C)
    Tfold = S * b1[None, :] + T                                                # conv1 bias folded in
    W1s = S[:, :, None] * w1[None, :, :]                                       # (B, C, Din)  scale folded into W1
    T3 = Tfold.reshape(B, C, 1)
    b4_2 = b4.reshape(3, 1)

    # ---- tiling ----
    bb = B if B <= 8 else 1          # merge small batches into the block
    assert B % bb == 0
    M_pad = ((M + 127) // 128) * 128 # keep output stores lane-dense (no masked vst)
    if m_tile is None:
        m_tile = _pick_m_tile(M_pad, bb, Din, C, want_multi=(B // bb) == 1)
    assert M_pad % m_tile == 0, (M_pad, m_tile)
    grid = (B // bb, M_pad // m_tile)

    x_run = x if M_pad == M else jnp.pad(x, ((0, 0), (0, 0), (0, M_pad - M)))

    # VMEM estimate: double-buffered x/out blocks + per-b weight blocks + intermediates.
    x_blk = bb * Din * m_tile * 4
    o_blk = bb * 3 * m_tile * 4
    w_blk = bb * C * (Din + 1) * 4 + (3 * C + 3) * 4
    inter = bb * 4 * C * m_tile * 4
    est = 2 * (x_blk + o_blk) + 2 * w_blk + inter
    vmem_limit = int(min(48 * 2**20, max(32 * 2**20, 2 * est)))

    out = pl.pallas_call(
        _decoder_kernel,
        out_shape=jax.ShapeDtypeStruct((B, 3, M_pad), jnp.float32),
        grid=grid,
        in_specs=[
            pl.BlockSpec((bb, Din, m_tile), lambda bi, mi: (bi, 0, mi)),   # x tile
            pl.BlockSpec((bb, C, Din), lambda bi, mi: (bi, 0, 0)),         # fused (S*W1) weights
            pl.BlockSpec((bb, C, 1), lambda bi, mi: (bi, 0, 0)),           # fused shift T
            pl.BlockSpec((3, C), lambda bi, mi: (0, 0)),                   # W4 (full)
            pl.BlockSpec((3, 1), lambda bi, mi: (0, 0)),                   # b4
        ],
        out_specs=pl.BlockSpec((bb, 3, m_tile), lambda bi, mi: (bi, 0, mi)),
        compiler_params=pltpu.CompilerParams(
            dimension_semantics=("parallel", "parallel"),
            vmem_limit_bytes=vmem_limit),
    )(x_run, W1s, T3, w4, b4_2)

    if M_pad != M:
        out = out[:, :, :M]
    return out


def mview_decoder_ref(x_ncm, params):
    """Pure-JAX reference mirroring the PyTorch forward (NCM layout, direct stats)."""
    B, Din, M = x_ncm.shape
    C = params['w1_cd'].shape[0]
    h = jnp.einsum('cd,bdm->bcm', params['w1_cd'], x_ncm) + params['b1'].reshape(1, C, 1)
    mu = jnp.mean(h, axis=2, keepdims=True)
    var = jnp.mean(jnp.square(h - mu), axis=2, keepdims=True)
    h = (h - mu) / jnp.sqrt(var + ADA_EPS)
    h = h * params['ada_w'].reshape(B, C, 1) + params['ada_b'].reshape(B, C, 1)
    bmu = jnp.mean(h, axis=(0, 2), keepdims=True)
    bvar = jnp.mean(jnp.square(h - bmu), axis=(0, 2), keepdims=True)
    h = (h - bmu) / jnp.sqrt(bvar + BN_EPS)
    h = h * params['bn_g'].reshape(1, C, 1) + params['bn_b'].reshape(1, C, 1)
    h = jnp.maximum(h, 0.0)
    y = jnp.einsum('nc,bcm->bnm', params['w4_nc'], h) + params['b4'].reshape(1, 3, 1)
    return jnp.tanh(y)


if __name__ == "__main__":
    # Module-consistent small shapes:
    #   input_dim=2, bottleneck_size=128 -> C = 128 // 4 = 32, B=2, M=256 points.
    B, Din, M = 2, 2, 256
    bottleneck_size = 128
    C = bottleneck_size // 4

    key = jax.random.PRNGKey(0)
    ks = jax.random.split(key, 8)

    params = {
        # conv1: torch weight (C, Din, 1) squeezed -> (C, Din)
        'w1_cd': jax.random.normal(ks[0], (C, Din), jnp.float32) * 0.2,
        'b1':    jax.random.normal(ks[1], (C,), jnp.float32) * 0.1,
        # AdaIN weight/bias: assigned externally in torch, shape (B*C,), b-major
        'ada_w': 1.0 + 0.1 * jax.random.normal(ks[2], (B * C,), jnp.float32),
        'ada_b': 0.1 * jax.random.normal(ks[3], (B * C,), jnp.float32),
        # BatchNorm1d affine params (C,)
        'bn_g':  1.0 + 0.1 * jax.random.normal(ks[4], (C,), jnp.float32),
        'bn_b':  0.1 * jax.random.normal(ks[5], (C,), jnp.float32),
        # conv4: torch weight (3, C, 1) squeezed -> (3, C)
        'w4_nc': jax.random.normal(ks[6], (C, 3), jnp.float32).T * 0.2,
        'b4':    jax.random.normal(ks[7], (3,), jnp.float32) * 0.1,
    }
    # TODO(synk): use_SElayer=False path only (module default); SELayer1D branch not implemented.

    x = jax.random.normal(jax.random.PRNGKey(42), (B, Din, M), jnp.float32)

    out = jax.block_until_ready(mview_decoder(x, params))
    ref = jax.block_until_ready(mview_decoder_ref(x, params))

    assert out.shape == (B, 3, M), out.shape
    np.testing.assert_allclose(np.asarray(out), np.asarray(ref), rtol=2e-4, atol=2e-4)

    print("KERNEL_OK")
</pallas_src>

<mosaic_0001>
module attributes {stable_mosaic.version = 11 : i64} {
  func.func @_decoder_kernel(%arg0: i32, %arg1: i32, %arg2: memref<2x2x128xf32, #tpu.memory_space<vmem>>, %arg3: memref<2x32x2xf32, #tpu.memory_space<vmem>>, %arg4: memref<2x32x1xf32, #tpu.memory_space<vmem>>, %arg5: memref<3x32xf32, #tpu.memory_space<vmem>>, %arg6: memref<3x1xf32, #tpu.memory_space<vmem>>, %arg7: memref<2x3x128xf32, #tpu.memory_space<vmem>>) attributes {dimension_semantics = [#tpu.dimension_semantics<parallel>, #tpu.dimension_semantics<parallel>], iteration_bounds = array<i64: 1, 2>, scalar_prefetch = 0 : i64, scratch_operands = 0 : i64, tpu.core_type = #tpu.core_type<tc>, window_params = [{transform_indices = @transform_0, window_bounds = array<i64: 2, 2, 128>}, {transform_indices = @transform_1, window_bounds = array<i64: 2, 32, 2>}, {transform_indices = @transform_2, window_bounds = array<i64: 2, 32, 1>}, {pipeline_mode = #tpu.pipeline_mode<synchronous>, transform_indices = @transform_3, window_bounds = array<i64: 3, 32>}, {pipeline_mode = #tpu.pipeline_mode<synchronous>, transform_indices = @transform_4, window_bounds = array<i64: 3, 1>}, {transform_indices = @transform_5, window_bounds = array<i64: 2, 3, 128>}]} {
    %c0 = arith.constant 0 : index
    %c0_0 = arith.constant 0 : index
    %0 = vector.load %arg5[%c0, %c0_0] : memref<3x32xf32, #tpu.memory_space<vmem>>, vector<3x32xf32>
    %c0_1 = arith.constant 0 : index
    %c0_2 = arith.constant 0 : index
    %1 = vector.load %arg6[%c0_1, %c0_2] : memref<3x1xf32, #tpu.memory_space<vmem>>, vector<3x1xf32>
    %c0_3 = arith.constant 0 : index
    %c0_4 = arith.constant 0 : index
    %c0_5 = arith.constant 0 : index
    %2 = vector.load %arg2[%c0_3, %c0_4, %c0_5] : memref<2x2x128xf32, #tpu.memory_space<vmem>>, vector<1x2x128xf32>
    %3 = vector.shape_cast %2 : vector<1x2x128xf32> to vector<2x128xf32>
    %c0_6 = arith.constant 0 : index
    %c0_7 = arith.constant 0 : index
    %c0_8 = arith.constant 0 : index
    %4 = vector.load %arg3[%c0_6, %c0_7, %c0_8] : memref<2x32x2xf32, #tpu.memory_space<vmem>>, vector<1x32x2xf32>
    %5 = vector.shape_cast %4 : vector<1x32x2xf32> to vector<32x2xf32>
    %6 = vector.extract_strided_slice %5 {offsets = [0, 0], sizes = [32, 1], strides = [1, 1]} : vector<32x2xf32> to vector<32x1xf32>
    %7 = vector.extract_strided_slice %3 {offsets = [0, 0], sizes = [1, 128], strides = [1, 1]} : vector<2x128xf32> to vector<1x128xf32>
    %8 = vector.broadcast %6 : vector<32x1xf32> to vector<32x128xf32>
    %9 = vector.broadcast %7 : vector<1x128xf32> to vector<32x128xf32>
    %10 = arith.mulf %8, %9 : vector<32x128xf32>
    %c0_9 = arith.constant 0 : index
    %c0_10 = arith.constant 0 : index
    %c0_11 = arith.constant 0 : index
    %11 = vector.load %arg4[%c0_9, %c0_10, %c0_11] : memref<2x32x1xf32, #tpu.memory_space<vmem>>, vector<1x32x1xf32>
    %12 = vector.shape_cast %11 : vector<1x32x1xf32> to vector<32x1xf32>
    %13 = vector.broadcast %12 : vector<32x1xf32> to vector<32x128xf32>
    %14 = arith.addf %10, %13 : vector<32x128xf32>
    %15 = vector.extract_strided_slice %5 {offsets = [0, 1], sizes = [32, 1], strides = [1, 1]} : vector<32x2xf32> to vector<32x1xf32>
    %16 = vector.extract_strided_slice %3 {offsets = [1, 0], sizes = [1, 128], strides = [1, 1]} : vector<2x128xf32> to vector<1x128xf32>
    %17 = vector.broadcast %15 : vector<32x1xf32> to vector<32x128xf32>
    %18 = vector.broadcast %16 : vector<1x128xf32> to vector<32x128xf32>
    %19 = arith.mulf %17, %18 : vector<32x128xf32>
    %20 = arith.addf %14, %19 : vector<32x128xf32>
    %cst = arith.constant 0.000000e+00 : f32
    %21 = vector.broadcast %cst : f32 to vector<32x128xf32>
    %22 = arith.maximumf %20, %21 : vector<32x128xf32>
    %cst_12 = arith.constant dense<0.000000e+00> : vector<3x128xf32>
    %23 = tpu.matmul %0, %22, %cst_12 {dimension_numbers = #tpu.dot_dimension_numbers<[1], [0], [0], [1], [0, 0, 1, 1], [], []>} : vector<3x32xf32>, vector<32x128xf32>, vector<3x128xf32> -> vector<3x128xf32>
    %24 = vector.broadcast %1 : vector<3x1xf32> to vector<3x128xf32>
    %25 = arith.addf %23, %24 : vector<3x128xf32>
    %26 = math.tanh %25 : vector<3x128xf32>
    %c0_13 = arith.constant 0 : index
    %c0_14 = arith.constant 0 : index
    %c0_15 = arith.constant 0 : index
    %27 = vector.load %arg7[%c0_13, %c0_14, %c0_15] : memref<2x3x128xf32, #tpu.memory_space<vmem>>, vector<1x3x128xf32>
    %28 = vector.shape_cast %27 : vector<1x3x128xf32> to vector<3x128xf32>
    %29 = vector.shape_cast %26 : vector<3x128xf32> to vector<1x3x128xf32>
    tpu.vector_store %arg7[%c0_13, %c0_14, %c0_15], %29 {strides = array<i32>} : memref<2x3x128xf32, #tpu.memory_space<vmem>>, vector<1x3x128xf32>,
    %c1 = arith.constant 1 : index
    %c0_16 = arith.constant 0 : index
    %c0_17 = arith.constant 0 : index
    %30 = vector.load %arg2[%c1, %c0_16, %c0_17] : memref<2x2x128xf32, #tpu.memory_space<vmem>>, vector<1x2x128xf32>
    %31 = vector.shape_cast %30 : vector<1x2x128xf32> to vector<2x128xf32>
    %c1_18 = arith.constant 1 : index
    %c0_19 = arith.constant 0 : index
    %c0_20 = arith.constant 0 : index
    %32 = vector.load %arg3[%c1_18, %c0_19, %c0_20] : memref<2x32x2xf32, #tpu.memory_space<vmem>>, vector<1x32x2xf32>
    %33 = vector.shape_cast %32 : vector<1x32x2xf32> to vector<32x2xf32>
    %34 = vector.extract_strided_slice %33 {offsets = [0, 0], sizes = [32, 1], strides = [1, 1]} : vector<32x2xf32> to vector<32x1xf32>
    %35 = vector.extract_strided_slice %31 {offsets = [0, 0], sizes = [1, 128], strides = [1, 1]} : vector<2x128xf32> to vector<1x128xf32>
    %36 = vector.broadcast %34 : vector<32x1xf32> to vector<32x128xf32>
    %37 = vector.broadcast %35 : vector<1x128xf32> to vector<32x128xf32>
    %38 = arith.mulf %36, %37 : vector<32x128xf32>
    %c1_21 = arith.constant 1 : index
    %c0_22 = arith.constant 0 : index
    %c0_23 = arith.constant 0 : index
    %39 = vector.load %arg4[%c1_21, %c0_22, %c0_23] : memref<2x32x1xf32, #tpu.memory_space<vmem>>, vector<1x32x1xf32>
    %40 = vector.shape_cast %39 : vector<1x32x1xf32> to vector<32x1xf32>
    %41 = vector.broadcast %40 : vector<32x1xf32> to vector<32x128xf32>
    %42 = arith.addf %38, %41 : vector<32x128xf32>
    %43 = vector.extract_strided_slice %33 {offsets = [0, 1], sizes = [32, 1], strides = [1, 1]} : vector<32x2xf32> to vector<32x1xf32>
    %44 = vector.extract_strided_slice %31 {offsets = [1, 0], sizes = [1, 128], strides = [1, 1]} : vector<2x128xf32> to vector<1x128xf32>
    %45 = vector.broadcast %43 : vector<32x1xf32> to vector<32x128xf32>
    %46 = vector.broadcast %44 : vector<1x128xf32> to vector<32x128xf32>
    %47 = arith.mulf %45, %46 : vector<32x128xf32>
    %48 = arith.addf %42, %47 : vector<32x128xf32>
    %cst_24 = arith.constant 0.000000e+00 : f32
    %49 = vector.broadcast %cst_24 : f32 to vector<32x128xf32>
    %50 = arith.maximumf %48, %49 : vector<32x128xf32>
    %cst_25 = arith.constant dense<0.000000e+00> : vector<3x128xf32>
    %51 = tpu.matmul %0, %50, %cst_25 {dimension_numbers = #tpu.dot_dimension_numbers<[1], [0], [0], [1], [0, 0, 1, 1], [], []>} : vector<3x32xf32>, vector<32x128xf32>, vector<3x128xf32> -> vector<3x128xf32>
    %52 = vector.broadcast %1 : vector<3x1xf32> to vector<3x128xf32>
    %53 = arith.addf %51, %52 : vector<3x128xf32>
    %54 = math.tanh %53 : vector<3x128xf32>
    %c1_26 = arith.constant 1 : index
    %c0_27 = arith.constant 0 : index
    %c0_28 = arith.constant 0 : index
    %55 = vector.load %arg7[%c1_26, %c0_27, %c0_28] : memref<2x3x128xf32, #tpu.memory_space<vmem>>, vector<1x3x128xf32>
    %56 = vector.shape_cast %55 : vector<1x3x128xf32> to vector<3x128xf32>
    %57 = vector.shape_cast %54 : vector<3x128xf32> to vector<1x3x128xf32>
    tpu.vector_store %arg7[%c1_26, %c0_27, %c0_28], %57 {strides = array<i32>} : memref<2x3x128xf32, #tpu.memory_space<vmem>>, vector<1x3x128xf32>,
    return
  }
  func.func @transform_0(%arg0: i32, %arg1: i32) -> (i32, i32, i32) {
    %c0_i32 = arith.constant 0 : i32
    %c0_i32_0 = arith.constant 0 : i32
    return %arg0, %c0_i32, %arg1 : i32, i32, i32
  }
  func.func @transform_1(%arg0: i32, %arg1: i32) -> (i32, i32, i32) {
    %c0_i32 = arith.constant 0 : i32
    %c0_i32_0 = arith.constant 0 : i32
    %c0_i32_1 = arith.constant 0 : i32
    return %arg0, %c0_i32, %c0_i32_0 : i32, i32, i32
  }
  func.func @transform_2(%arg0: i32, %arg1: i32) -> (i32, i32, i32) {
    %c0_i32 = arith.constant 0 : i32
    %c0_i32_0 = arith.constant 0 : i32
    %c0_i32_1 = arith.constant 0 : i32
    return %arg0, %c0_i32, %c0_i32_0 : i32, i32, i32
  }
  func.func @transform_3(%arg0: i32, %arg1: i32) -> (i32, i32) {
    %c0_i32 = arith.constant 0 : i32
    %c0_i32_0 = arith.constant 0 : i32
    %c0_i32_1 = arith.constant 0 : i32
    return %c0_i32, %c0_i32_0 : i32, i32
  }
  func.func @transform_4(%arg0: i32, %arg1: i32) -> (i32, i32) {
    %c0_i32 = arith.constant 0 : i32
    %c0_i32_0 = arith.constant 0 : i32
    %c0_i32_1 = arith.constant 0 : i32
    return %c0_i32, %c0_i32_0 : i32, i32
  }
  func.func @transform_5(%arg0: i32, %arg1: i32) -> (i32, i32, i32) {
    %c0_i32 = arith.constant 0 : i32
    %c0_i32_0 = arith.constant 0 : i32
    return %arg0, %c0_i32, %arg1 : i32, i32, i32
  }
}

</mosaic_0001>

<bundles_post_ra>
// kernel: tpu_custom_call.1
= control target key start
LH: loop header
LB: loop body
LE: loop exit
PB: predicated region body
PF: predicated region fallthrough
CT: control target
= control target key end

     0   :  { %s1032_s18 = smov 0   ;;  %s1034_s19 = smov 0   ;;  %s1168_s0 = inlined_call_operand.vmem [shape: f32[2,2,256], index: 0, kind: input, shape index: {}]   ;;  %s1169_s1 = inlined_call_operand.vmem [shape: f32[2,32,2], index: 1, kind: input, shape index: {}]   ;;  %s1170_s2 = inlined_call_operand.vmem [shape: f32[2,32,1], index: 2, kind: input, shape index: {}]   ;;  %s1171_s3 = inlined_call_operand.vmem [shape: f32[3,32], index: 3, kind: input, shape index: {}]   ;;  %s1172_s4 = inlined_call_operand.vmem [shape: f32[3,1], index: 4, kind: input, shape index: {}]   ;;  %s1173_s5 = inlined_call_operand.vmem [shape: f32[2,3,256], index: 5, kind: output, shape index: {}]  }
   0x1   :  { %s1036_s20 = smov 0   ;;  %s1038_s21 = smov 0  }
   0x2   :  { %s1040_s22 = smov 0  }
   0x3 LB: > { %s24_s23 = sadd.s32 1, %s991_s21  ;;  %s826_s24 = sadd.s32 4294967295, %s995_s22   ;;  %s995_s22 = sphi %s1040_s22, %s15_s22   ;;  %s991_s21 = sphi %s1038_s21, %s1178_s21   ;;  %s987_s20 = sphi %s1036_s20, %s1177_s20   ;;  %s983_s19 = sphi %s1034_s19, %s1176_s19   ;;  %s979_s18 = sphi %s1032_s18, %s1175_s18  }
   0x4   : > { %p25_p0 = scmp.ge.s32.totalorder %s24_s23, 2  ;;  %p43_p1 = scmp.ne.s32.totalorder %s983_s19, %s979_s18 }
   0x5   : > { %p44_p2 = scmp.eq.s32.totalorder %s995_s22, 0  ;;  %p169_p4 = scmp.eq.s32.totalorder %s826_s24, 1 }
   0x6   : > { %s1180_s23 = smov (%p25_p0, %s24_s23), 0  ;;  %s36_s26 = sadd.s32 1, %s983_s19 }
   0x7   : > { %p45_p3 = por %p44_p2, %p43_p1  ;;  %s32_s25 = ssub.s32 %s991_s21, %s1180_s23 }
   0x8   : > { %p34_p5 = scmp.eq.s32.totalorder %s32_s25, 0  ;;  %p1067_p6 = por %p169_p4, %p43_p1 }
   0x9   : > { %p831_p7 = scmp.ge.s32.totalorder %s995_s22, 2 }
   0xa   : > { %s1072_s28 = scalar_select %p34_p5, %s983_s19, %s36_s26  }
   0xb   : > { %217 = sbr.rel (%p831_p7) target bundleno = 25 (0x19), region = 32 }
  0x12   : > { %220 = sbr.rel (!%p45_p3) target bundleno = 25 (0x19), region = 36  ;;  %s222_s29 = sand.u32 (%p45_p3), 1, %s983_s19  }
  0x13   : > { %s833_s30 = sshll.u32 (%p45_p3), %s991_s21, 1  ;;  %s832_s6 = sshll.u32 (%p45_p3), %s222_s29, 2 }
  0x14   : > { %s229_s9 = scalar_lea.vmem (%p45_p3), %s1168_s0, %s833_s30  ;;  %s224_s10 = scalar_lea.vmem (%p45_p3), [#allocation2], %s832_s6 }
  0x15   : > { %v245_v0 = vld [vmem:[%s229_s9] sm:$0x3] (%p45_p3)  ;;  %v247_v1 = vld [vmem:[%s229_s9 + $0x4] sm:$0x3] (%p45_p3) }
  0x16   : > { %246 = vst [vmem:[%s224_s10] sm:$0x3] (%p45_p3), %v245_v0  ;;  %248 = vst [vmem:[%s224_s10 + $0x2] sm:$0x3] (%p45_p3), %v247_v1 }
  0x19 PF: > { %p834_p8 = scmp.ge.s32.totalorder %s995_s22, 1  ;;  %p266_p9 = scmp.lt.s32.totalorder %s995_s22, 3 }
  0x1b   : > { %p267_p10 = pnand %p834_p8, %p266_p9 }
  0x1c   : > { %v839_v2 = vld [vmem:[%s1169_s1 + $0x20] sm:$0xff] (!%p267_p10)  ;;  %v997_v4 = vmov (!%p267_p10), 1   ;;  %v998_v5 = vmov (!%p267_p10), 0   ;;  %v840_v6 = vld [vmem:[%s1169_s1 + $0x28] sm:$0xff] (!%p267_p10)  ;;  %v332_v7 = vld [vmem:[%s1169_s1 + $0x10] sm:$0xff] (!%p267_p10)  ;;  %v999_v13 = vmov (!%p267_p10), 0.0|0.0   ;;  %v354_v23 = vlaneseq (!%p267_p10) }
  0x1d   : > { %270 = sbr.rel (%p267_p10) target bundleno = 462 (0x1ce), region = 70  ;;  %v330_v3 = vld [vmem:[%s1169_s1] sm:$0xff] (!%p267_p10)  ;;  %943 = vset.pattern.permute.xlu0 (!%p267_p10), %v997_v4  ;;  %942 = vset.pattern.permute.xlu1 (!%p267_p10), %v998_v5  ;;  %v363_v8 = vld [vmem:[%s1170_s2 + $0x8] sm:$0xff] (!%p267_p10)  ;;  %v841_v14 = vld [vmem:[%s1169_s1 + $0x30] sm:$0xff] (!%p267_p10)  ;;  %vm1000_vm0 = vmmov (!%p267_p10), 0   ;;  %v1001_v22 = vmov (!%p267_p10), 0.0  }
  0x1e   : > { %512 = vperm.xlu1 (!%p267_p10), %942, %v839_v2   ;;  %391 = vperm.xlu0 (!%p267_p10), %943, %v330_v3   ;;  %v331_v9 = vld [vmem:[%s1169_s1 + $0x8] sm:$0xff] (!%p267_p10)  ;;  %v362_v10 = vld [vmem:[%s1170_s2] sm:$0xff] (!%p267_p10)  ;;  %v333_v15 = vld [vmem:[%s1169_s1 + $0x18] sm:$0xff] (!%p267_p10)  ;;  %s273_s11 = sand.u32 (!%p267_p10), 1, %s979_s18   ;;  %v355_v26 = vshrl.u32 (!%p267_p10), %v354_v23, 7  ;;  %vm427_vm1 = vcmask (!%p267_p10), 261120  }
  0x1f   : > { %v843_v11 = vld [vmem:[%s1170_s2 + $0x20] sm:$0xff] (!%p267_p10)  ;;  %v844_v12 = vld [vmem:[%s1170_s2 + $0x28] sm:$0xff] (!%p267_p10)  ;;  %885 = vmatprep.subr.bf16.mxu0 (!%p267_p10), %v999_v13  ;;  %891 = vmatprep.subr.bf16.mxu1 (!%p267_p10), %v999_v13  ;;  %v364_v16 = vld [vmem:[%s1170_s2 + $0x10] sm:$0xff] (!%p267_p10)  ;;  %s835_s12 = sshll.u32 (!%p267_p10), %s273_s11, 2  ;;  %s836_s16 = sshll.u32 (!%p267_p10), %s273_s11, 3 }
  0x20   : > { %v842_v17 = vld [vmem:[%s1169_s1 + $0x38] sm:$0xff] (!%p267_p10)  ;;  %v328_v20 = vld [vmem:[%s1172_s4] sm:$0x7] (!%p267_p10)  ;;  %v845_v21 = vld [vmem:[%s1170_s2 + $0x30] sm:$0xff] (!%p267_p10)  ;;  %871 = vmatprep.mubr.msk.f32.mxu0 (!%p267_p10), %vm1000_vm0, %v1001_v22  ;;  %882 = vmatprep.mubr.msk.f32.mxu1 (!%p267_p10), %vm1000_vm0, %v1001_v22  ;;  %s275_s13 = scalar_lea.vmem (!%p267_p10), [#allocation2], %s835_s12  ;;  %v356_v30 = vsub.s32 (!%p267_p10), 0, %v355_v26 }
  0x21   : > { %v846_v18 = vld [vmem:[%s1170_s2 + $0x38] sm:$0xff] (!%p267_p10)  ;;  %v329_v29 = vld [vmem:[%s275_s13] sm:$0x3] (!%p267_p10)  ;;  %v408_v31 = vsub.s32 (!%p267_p10), 1, %v355_v26  ;;  %v838_v43 = vld [vmem:[%s275_s13 + $0x2] sm:$0x3] (!%p267_p10) }
  0x22   : > { %517 = vperm.xlu1 (!%p267_p10), %942, %v840_v6   ;;  %399 = vperm.xlu0 (!%p267_p10), %943, %v332_v7   ;;  %v365_v19 = vld [vmem:[%s1170_s2 + $0x18] sm:$0xff] (!%p267_p10)  ;;  %v357_v34 = vrot.slane (!%p267_p10), %v329_v29, %v356_v30  ;;  %v533_v48 = vrot.slane (!%p267_p10), %v838_v43, %v356_v30  ;;  %s310_s17 = scalar_lea.vmem (!%p267_p10), [#allocation3], %s836_s16 }
  0x23   : > { %v409_v35 = vrot.slane (!%p267_p10), %v329_v29, %v408_v31  ;;  %v586_v50 = vrot.slane (!%p267_p10), %v838_v43, %v408_v31 }
  0x24   : > { %s850_s24 = sshll.u32 (%p1067_p6), %s987_s20, 2 }
  0x25   : > { %s683_s18 = scalar_lea.vmem (%p1067_p6), %s1173_s5, %s850_s24 }
  0x26   : > { %373 = vperm.xlu1 %942, %v363_v8   ;;  %948 = vset.pattern.permute.xlu0 %v998_v5 }
  0x27   : > { %336 = vperm.xlu0 %948, %v330_v3  }
  0x2a   : > { %944 = vset.pattern.permute.xlu1 %v997_v4 }
  0x2b   : > { %395 = vperm.xlu1 %944, %v331_v9   ;;  %341 = vperm.xlu0 %948, %v331_v9  }
  0x2f   : > { %945 = vset.pattern.permute.xlu1 %v998_v5  ;;  %368 = vperm.xlu0 %948, %v362_v10  }
  0x30   : > { %545 = vperm.xlu1 %945, %v843_v11  }
  0x33   : > { %550 = vperm.xlu0 %948, %v844_v12  }
  0x34   : > { %946 = vset.pattern.permute.xlu1 %v997_v4 }
  0x35   : > { %568 = vperm.xlu1 %946, %v839_v2  }
  0x37   : > { %346 = vperm.xlu0 %948, %v332_v7  }
  0x39   : > { %572 = vperm.xlu1 %946, %v840_v6  }
  0x3b   : > { %522 = vperm.xlu0 %948, %v841_v14  }
  0x3d   : > { %947 = vset.pattern.permute.xlu1 %v998_v5 }
  0x3e   : > { %351 = vperm.xlu1 %947, %v333_v15  }
  0x3f   : > { %378 = vperm.xlu0 %948, %v364_v16  }
  0x42   : > { %527 = vperm.xlu1 %947, %v842_v17  }
  0x43   : > { %560 = vperm.xlu0 %948, %v846_v18  }
  0x46   : > { %383 = vperm.xlu1 %947, %v365_v19  }
  0x47   : > { %424 = vperm.xlu0 %948, %v328_v20  }
  0x4a   : > { %949 = vset.pattern.permute.xlu1 %v997_v4 }
  0x4b   : > { %403 = vperm.xlu1 %949, %v333_v15   ;;  %952 = vset.pattern.permute.xlu0 %v997_v4 }
  0x4f   : > { %950 = vset.pattern.permute.xlu1 %v998_v5 }
  0x50   : > { %555 = vperm.xlu1 %950, %v845_v21  }
  0x54   : > { %951 = vset.pattern.permute.xlu1 %v997_v4 }
  0x55   : > { %576 = vperm.xlu1 %951, %v841_v14  }
  0x59   : > { %580 = vperm.xlu1 %951, %v842_v17  }
  0x9d   : > { %v513_v24 = vpop.permute.xlu1 %512  ;;  %v392_v25 = vpop.permute.xlu0 %391 }
  0x9e   : > { %v410_v40 = vmul.f32 %v409_v35, %v392_v25  ;;  %v534_v55 = vmul.f32 %v533_v48, %v513_v24 }
  0xa1   : > { %v518_v27 = vpop.permute.xlu1 %517  ;;  %v400_v28 = vpop.permute.xlu0 %399 }
  0xa2   : > { %v535_v58 = vmul.f32 %v533_v48, %v518_v27  ;;  %v412_v12 = vmul.f32 %v409_v35, %v400_v28 }
  0xa5   : > { %v374_v32 = vpop.permute.xlu1 %373 }
  0xa6   : > { %v337_v33 = vpop.permute.xlu0 %336 }
  0xa7   : > { %v358_v38 = vmul.f32 %v357_v34, %v337_v33 }
  0xaa   : > { %v396_v36 = vpop.permute.xlu1 %395  ;;  %v342_v37 = vpop.permute.xlu0 %341 }
  0xab   : > { %v359_v39 = vmul.f32 %v357_v34, %v342_v37  ;;  %v411_v41 = vmul.f32 %v409_v35, %v396_v36 }
  0xad   : > { %v387_v42 = vadd.f32 %v374_v32, %v359_v39 }
  0xae   : > { %v369_v44 = vpop.permute.xlu0 %368 }
  0xaf   : > { %v386_v45 = vadd.f32 %v369_v44, %v358_v38  ;;  %v546_v46 = vpop.permute.xlu1 %545  ;;  %v415_v47 = vadd.f32 %v411_v41, %v387_v42 }
  0xb0   : > { %v563_v59 = vadd.f32 %v546_v46, %v534_v55 }
  0xb1   : > { %v414_v49 = vadd.f32 %v410_v40, %v386_v45  ;;  %v419_v53 = vmax.f32 %v415_v47, 0.0 }
  0xb2   : > { %v551_v51 = vpop.permute.xlu0 %550 }
  0xb3   : > { %v418_v52 = vmax.f32 %v414_v49, 0.0  ;;  %v564_v62 = vadd.f32 %v551_v51, %v535_v58 }
  0xb4   : > { %v569_v54 = vpop.permute.xlu1 %568 }
  0xb5   : > { %v587_v56 = vmul.f32 %v586_v50, %v569_v54  ;;  %v886_v57 = vpack.c.bf16 %v419_v53, %v418_v52 }
  0xb6   : > { %v347_v60 = vpop.permute.xlu0 %346 }
  0xb7   : > { %887 = vmatpush3.bf16.msra.mxu0 %v886_v57  ;;  %v591_v63 = vadd.f32 %v587_v56, %v563_v59  ;;  %v360_v8 = vmul.f32 %v357_v34, %v347_v60 }
  0xb8   : > { %v573_v61 = vpop.permute.xlu1 %572  ;;  %888 = vmatprep.subr.bf16.mxu0 %v999_v13 }
  0xb9   : > { %v588_v0 = vmul.f32 %v586_v50, %v573_v61  ;;  %v595_v2 = vmax.f32 %v591_v63, 0.0 }
  0xba   : > { %v523_v5 = vpop.permute.xlu0 %522 }
  0xbb   : > { %v592_v1 = vadd.f32 %v588_v0, %v564_v62  ;;  %v536_v25 = vmul.f32 %v533_v48, %v523_v5 }
  0xbd   : > { %v596_v3 = vmax.f32 %v592_v1, 0.0  ;;  %v352_v4 = vpop.permute.xlu1 %351 }
  0xbe   : > { %v379_v9 = vpop.permute.xlu0 %378  ;;  %v361_v14 = vmul.f32 %v357_v34, %v352_v4 }
  0xbf   : > { %v892_v6 = vpack.c.bf16 %v596_v3, %v595_v2  ;;  %v388_v11 = vadd.f32 %v379_v9, %v360_v8 }
  0xc1   : > { %v528_v7 = vpop.permute.xlu1 %527  ;;  %893 = vmatpush3.bf16.msra.mxu1 %v892_v6  ;;  %v416_v16 = vadd.f32 %v412_v12, %v388_v11 }
  0xc2   : > { %894 = vmatprep.subr.bf16.mxu1 %v999_v13  ;;  %v327_v13 = vld [vmem:[%s1171_s3] sm:$0x7]  ;;  %v537_v26 = vmul.f32 %v533_v48, %v528_v7  ;;  %v561_v28 = vpop.permute.xlu0 %560 }
  0xc3   : > { %v420_v20 = vmax.f32 %v416_v16, 0.0 }
  0xc4   : > { %v566_v31 = vadd.f32 %v561_v28, %v537_v26 }
  0xc5   : > { %v384_v10 = vpop.permute.xlu1 %383 }
  0xc6   : > { %v389_v17 = vadd.f32 %v384_v10, %v361_v14  ;;  %v425_v38 = vpop.permute.xlu0 %424 }
  0xca   : > { %v404_v15 = vpop.permute.xlu1 %403 }
  0xcb   : > { %v413_v18 = vmul.f32 %v409_v35, %v404_v15 }
  0xcd   : > { %v417_v19 = vadd.f32 %v413_v18, %v389_v17 }
  0xcf   : > { %v421_v21 = vmax.f32 %v417_v19, 0.0  ;;  %v556_v22 = vpop.permute.xlu1 %555 }
  0xd0   : > { %v565_v29 = vadd.f32 %v556_v22, %v536_v25 }
  0xd1   : > { %v889_v23 = vpack.c.bf16 %v421_v21, %v420_v20 }
  0xd3   : > { %890 = vmatpush3.bf16.msra.mxu0 %v889_v23 }
  0xd4   : > { %v577_v24 = vpop.permute.xlu1 %576 }
  0xd5   : > { %v589_v27 = vmul.f32 %v586_v50, %v577_v24 }
  0xd6   : > { %872 = vmatmul.mubr.msk.f32.vlgmr.msra.gmra.mrb[0].mxu0 %vm427_vm1, %v327_v13 }
  0xd7   : > { %v593_v32 = vadd.f32 %v589_v27, %v565_v29 }
  0xd8   : > { %v581_v30 = vpop.permute.xlu1 %580 }
  0xd9   : > { %v590_v33 = vmul.f32 %v586_v50, %v581_v30  ;;  %v597_v35 = vmax.f32 %v593_v32, 0.0 }
  0xdb   : > { %v594_v34 = vadd.f32 %v590_v33, %v566_v31 }
  0xdd   : > { %v598_v36 = vmax.f32 %v594_v34, 0.0 }
  0xdf   : > { %v895_v37 = vpack.c.bf16 %v598_v36, %v597_v35 }
  0xe1   : > { %896 = vmatpush3.bf16.msra.mxu1 %v895_v37 }
  0xe4   : > { %883 = vmatmul.mubr.msk.f32.vlgmr.msra.gmra.mrb[0].mxu1 %vm427_vm1, %v327_v13 }
 0x1a9   : > { %v497_v39 = vpop.f32.mrb[0].mxu0 }
 0x1aa   : > { %v498_v40 = vadd.f32 %v497_v39, %v425_v38  ;;  %v873_v41 = vpop.f32.mrb[1].mxu0 }
 0x1ac   : > { %953 = vtanh.f32 %v498_v40 }
 0x1b6   : > { %v954_v42 = vpop.eup %953 }
 0x1b7   : > { %502 = vst [vmem:[%s310_s17] sm:$0x7] %v954_v42  ;;  %v665_v43 = vpop.f32.mrb[0].mxu1 }
 0x1b8   : > { %v666_v44 = vadd.f32 %v665_v43, %v425_v38  ;;  %v884_v45 = vpop.f32.mrb[1].mxu1 }
 0x1ba   : > { %955 = vtanh.f32 %v666_v44 }
 0x1be   : > { %v699_v47 = vld [vmem:[%s310_s17] sm:$0xf] (%p1067_p6) }
 0x1bf   : > { %678 = sbr.rel (!%p1067_p6) target bundleno = 462 (0x1ce), region = 78  ;;  %700 = vst [vmem:[%s683_s18] sm:$0xf] (%p1067_p6), %v699_v47 }
 0x1c4   : > { %v956_v46 = vpop.eup %955 }
 0x1c5   : > { %848 = vst [vmem:[%s310_s17 + $0x4] sm:$0x7] %v956_v46 }
 0x1cc   : > { %v701_v48 = vld [vmem:[%s310_s17 + $0x4] sm:$0xf] }
 0x1cd   : > { %702 = vst [vmem:[%s683_s18 + $0x8] sm:$0xf] %v701_v48 }
 0x1ce PF: > { %s15_s22 = sadd.s32 1, %s995_s22   ;;  %s1175_s18 = smov %s983_s19 }
 0x1cf   : > { %p12_p11 = scmp.ge.s32.totalorder %s15_s22, 4   ;;  %s1176_s19 = smov %s1072_s28 }
 0x1d0   : > { %s1177_s20 = smov %s991_s21  ;;  %s1178_s21 = smov %s1180_s23 }
 0x1d1   :  { %14 = sbr.rel (!%p12_p11) target bundleno = 3 (0x3), region = 160 }

</bundles_post_ra>
